<compile_context>
chip_gen: v6e
topology: v6e:2x2x1
jax: 0.10.0
libtpu: 0.0.40
codegen_flags: <defaults>
</compile_context>

<pallas_src>
import jax
import jax.numpy as jnp
from jax.experimental import pallas as pl
from jax.experimental.pallas import tpu as pltpu

_LANES = 128


def _identity_copy_kernel(x_ref, o_ref):
    # Identity forward: o = x (tile-wise copy through VMEM).
    o_ref[...] = x_ref[...]


def _pick_block_rows(rows, row_bytes, itemsize):
    """Largest row-tile that divides `rows`, respects dtype sublane packing,
    and keeps the double-buffered in+out footprint well under VMEM."""
    # Sublane granularity by dtype packing: f32 -> 8, bf16 -> 16, int8 -> 32.
    min_rows = 8 * max(1, 4 // max(1, itemsize))
    # ~4 tiles resident (in + out, each double-buffered); stay comfortably
    # under the 32 MiB scoped VMEM default (and v7x's 64 MiB physical VMEM).
    vmem_budget = 8 * 1024 * 1024
    max_rows = max(min_rows, vmem_budget // (4 * row_bytes))
    if rows <= max_rows or rows % min_rows != 0:
        # Either everything fits in one block, or rows is not a multiple of the
        # sublane granularity: use a single full-extent block (block dims equal
        # the array dims, which always satisfies the (8,128) rule).
        return rows
    best = min_rows
    cand = min_rows
    while cand <= max_rows:
        if rows % cand == 0:
            best = cand
        cand += min_rows
    return best


def encoder_layer_new_forward(x, mask=None):
    """Pallas implementation of EncoderLayer_NEW.forward(x, mask) -> x."""
    del mask  # accepted and ignored, exactly like the reference forward
    orig_shape = x.shape
    total = x.size
    itemsize = jnp.dtype(x.dtype).itemsize

    if total % _LANES == 0 and total > 0:
        # Lane-dense 2-D view: last dim is exactly 128 lanes -> unmasked
        # full-lane stores for every generation.
        rows = total // _LANES
        x_flat = x.reshape(rows, _LANES)
        block_rows = _pick_block_rows(rows, _LANES * itemsize, itemsize)
        grid = (rows // block_rows,)
        block = (block_rows, _LANES)
        index_map = lambda i: (i, 0)
    else:
        # Fallback for non-lane-divisible totals: one full-extent block
        # (block dims == array dims, so the (8,128) rule is trivially met).
        x_flat = x
        grid = (1,)
        block = orig_shape
        nd = len(orig_shape)
        index_map = lambda i, _nd=nd: (0,) * _nd

    out_flat = pl.pallas_call(
        _identity_copy_kernel,
        out_shape=jax.ShapeDtypeStruct(x_flat.shape, x_flat.dtype),
        grid_spec=pl.GridSpec(
            grid=grid,
            in_specs=[pl.BlockSpec(block, index_map)],
            out_specs=pl.BlockSpec(block, index_map),
        ),
        # Output aliases the input buffer: no fresh HBM allocation when the
        # input is donatable (identity forward).
        input_output_aliases={0: 0},
        compiler_params=pltpu.CompilerParams(
            dimension_semantics=("parallel",),
        ),
    )(x_flat)

    return out_flat.reshape(orig_shape)


if __name__ == "__main__":
    key = jax.random.PRNGKey(0)
    B, S, D = 2, 8, 32  # batch, seq, d_model ("size")

    kx, km = jax.random.split(key)
    x = jax.random.normal(kx, (B, S, D), dtype=jnp.float32)
    mask = (jax.random.uniform(km, (B, 1, S)) > 0.1).astype(jnp.float32)

    out = encoder_layer_new_forward(x, mask)
    out = jax.block_until_ready(out)

    # The reference forward is identity: verify exact pass-through.
    assert out.shape == x.shape and out.dtype == x.dtype
    assert bool(jnp.array_equal(out, x))

    print("KERNEL_OK")
</pallas_src>

<mosaic_0001>
module attributes {stable_mosaic.version = 11 : i64} {
  func.func @_identity_copy_kernel(%arg0: i32, %arg1: memref<4x128xf32, #tpu.memory_space<vmem>>, %arg2: memref<4x128xf32, #tpu.memory_space<vmem>>) attributes {dimension_semantics = [#tpu.dimension_semantics<parallel>], iteration_bounds = array<i64: 1>, scalar_prefetch = 0 : i64, scratch_operands = 0 : i64, tpu.core_type = #tpu.core_type<tc>, window_params = [{transform_indices = @transform_0, window_bounds = array<i64: 4, 128>}, {transform_indices = @transform_1, window_bounds = array<i64: 4, 128>}]} {
    %c0 = arith.constant 0 : index
    %c0_0 = arith.constant 0 : index
    %0 = vector.load %arg1[%c0, %c0_0] : memref<4x128xf32, #tpu.memory_space<vmem>>, vector<4x128xf32>
    %c0_1 = arith.constant 0 : index
    %c0_2 = arith.constant 0 : index
    %1 = vector.load %arg2[%c0_1, %c0_2] : memref<4x128xf32, #tpu.memory_space<vmem>>, vector<4x128xf32>
    tpu.vector_store %arg2[%c0_1, %c0_2], %0 {strides = array<i32>} : memref<4x128xf32, #tpu.memory_space<vmem>>, vector<4x128xf32>,
    return
  }
  func.func @transform_0(%arg0: i32) -> (i32, i32) {
    %c0_i32 = arith.constant 0 : i32
    %c0_i32_0 = arith.constant 0 : i32
    return %arg0, %c0_i32 : i32, i32
  }
  func.func @transform_1(%arg0: i32) -> (i32, i32) {
    %c0_i32 = arith.constant 0 : i32
    %c0_i32_0 = arith.constant 0 : i32
    return %arg0, %c0_i32 : i32, i32
  }
}

</mosaic_0001>

<bundles_post_ra>
// kernel: tpu_custom_call.1
= control target key start
LH: loop header
LB: loop body
LE: loop exit
PB: predicated region body
PF: predicated region fallthrough
CT: control target
= control target key end

     0   :  { %6 = vsyncpa [#allocation3], 0  ;;  %s102_s0 = inlined_call_operand.hbm [shape: f32[4,128], index: 0, kind: input, shape index: {}, may-alias: {0,1}]   ;;  %s103_s1 = inlined_call_operand.hbm [shape: f32[4,128], index: 1, kind: output, shape index: {}, may-alias: {0,1}]  }
   0x1   :  { %7 = vsyncpa [#allocation4], 0  ;;  %s84_s6 = smov [#allocation2]  }
   0x2   :  { %s14_s7 = sshll.u32 %s84_s6, 4  ;;  %s15_s7 = int_to_ptr.vmem [resolvable:$true] %s14_s7 }
   0x3   :  { %s48_s8 = scalar_lea.vmem %s15_s7, 64  ;;  %p53_p1 = scmp.lt.s32.totalorder %s15_s7, %s15_s7 }
   0x4   :  { %p49_p0 = scmp.ne.s32.totalorder %s15_s7, %s48_s8  ;;  %p54_p2 = scmp.lt.s32.totalorder %s48_s8, %s48_s8 }
   0x6   :  { %p55_p3 = por %p54_p2, %p53_p1 }
   0x8   :  { %p56_p4 = pnand %p55_p3, %p49_p0 }
   0xa   :  { %59 = shalt.err (!%p56_p4)
}
   0xb   :  { %17 = dma.hbm_to_vmem [thread:$0]  %s102_s0, 64, %s15_s7, [#allocation3]  }
   0xc   :  { %80 = dma.done.wait [#allocation3], 64  }
   0xd   :  { %81 = vsyncadd [#allocation3], 4294967232  ;;  %s85_s11 = smov [#allocation5]   ;;  %v21_v0 = vld [vmem:[#allocation2] sm:$0xf] }
   0xe   :  { %s29_s12 = sshll.u32 %s85_s11, 4  ;;  %22 = vst [vmem:[#allocation5] sm:$0xf] %v21_v0  ;;  %s30_s12 = int_to_ptr.vmem [resolvable:$true] %s29_s12 }
   0xf   :  { %s60_s13 = scalar_lea.vmem %s30_s12, 64  ;;  %p65_p6 = scmp.lt.s32.totalorder %s30_s12, %s30_s12 }
  0x10   :  { %p61_p5 = scmp.ne.s32.totalorder %s30_s12, %s60_s13  ;;  %p66_p7 = scmp.lt.s32.totalorder %s60_s13, %s60_s13 }
  0x12   :  { %p67_p8 = por %p66_p7, %p65_p6 }
  0x14   :  { %p68_p9 = pnand %p67_p8, %p61_p5 }
  0x16   :  { %71 = shalt.err (!%p68_p9)
}
  0x17   :  { %32 = dma.vmem_to_hbm [thread:$0]  %s30_s12, 64, %s103_s1, [#allocation4]  }
  0x18   :  { %82 = dma.done.wait [#allocation4], 64  }
  0x19   :  { %83 = vsyncadd [#allocation4], 4294967232 }
  0x1a   :  { %36 = vsyncpa [#allocation3], 1 }
  0x1b   :  { %37 = vsyncpa [#allocation4], 1 }

</bundles_post_ra>
